<compile_context>
chip_gen: v6e
topology: v6e:2x2x1
jax: 0.10.0
libtpu: 0.0.40
codegen_flags: <defaults>
</compile_context>

<pallas_src>
import math

import jax
import jax.numpy as jnp
from jax.experimental import pallas as pl
from jax.experimental.pallas import tpu as pltpu


def _round_up(x, m):
    return ((x + m - 1) // m) * m


def _round_down(x, m):
    return (x // m) * m


def _pick_divisor_tile(dim, target, align):
    """Largest tile <= target that is a multiple of `align` and divides `dim`;
    falls back to the full dimension (always legal, always divides)."""
    if dim <= target:
        return dim
    t = _round_down(target, align)
    while t >= align:
        if dim % t == 0:
            return t
        t -= align
    return dim


def _vmem_capacity_bytes():
    try:
        return int(pltpu.get_tpu_info().vmem_capacity_bytes)
    except Exception:
        return 64 * 1024 * 1024  # v7x per-TC VMEM; safe lower bound everywhere


# --------------------------- kernels ---------------------------------------

def _linear_bias_kernel(x_ref, w_ref, b_ref, o_ref):
    # x_ref: [TM, K]  w_ref: [K, N] (resident)  b_ref: [1, N] f32  o_ref: [TM, N]
    acc = jnp.dot(x_ref[...], w_ref[...], preferred_element_type=jnp.float32)
    o_ref[...] = (acc + b_ref[...]).astype(o_ref.dtype)


def _linear_bias_kernel_ktiled(x_ref, w_ref, b_ref, o_ref, acc_ref):
    # Fallback for weights too large to keep resident: K is the (last,
    # "arbitrary") reduction axis with an f32 VMEM accumulator.
    k = pl.program_id(2)

    @pl.when(k == 0)
    def _():
        acc_ref[...] = jnp.zeros_like(acc_ref)

    acc_ref[...] += jnp.dot(x_ref[...], w_ref[...],
                            preferred_element_type=jnp.float32)

    @pl.when(k == pl.num_programs(2) - 1)
    def _():
        o_ref[...] = (acc_ref[...] + b_ref[...]).astype(o_ref.dtype)


# --------------------------- wrappers ---------------------------------------

def prepare_value_embedding_params(weight, bias, *, d_model, value_sqrt,
                                   compute_dtype=None):
    """Transpose weight to [K, N] and fold sqrt(d_model) into weight/bias once.

    Call this once (or under jit with closed-over params so it constant-folds)
    instead of redoing the transpose+scale HBM pass every forward.
    Set compute_dtype=jnp.bfloat16 to halve the streamed-activation bytes
    (keep the f32 accumulation; loosen tolerances accordingly).
    """
    scale = math.sqrt(d_model) if value_sqrt else 1.0
    if compute_dtype is None:
        compute_dtype = weight.dtype
    w_t = (weight.T.astype(jnp.float32) * scale).astype(compute_dtype)
    b2d = (bias.astype(jnp.float32) * scale).reshape(1, -1)
    return w_t, b2d


def value_embedding_apply(x, w_t, b2d, *, force_pallas=False, out_dtype=None):
    """x: [..., d_input]; w_t: [d_input, d_model] (scale folded); b2d: [1, d_model] f32."""
    if out_dtype is None:
        out_dtype = x.dtype
    d_input, d_model = w_t.shape
    lead_shape = x.shape[:-1]
    M = 1
    for s in lead_shape:
        M *= int(s)
    x2d = x.reshape(M, d_input).astype(w_t.dtype)

    x_bytes = jnp.dtype(w_t.dtype).itemsize
    out_bytes = jnp.dtype(out_dtype).itemsize

    # Tiny-problem / narrow-output fallback: ~0.35 us/grid-step overhead plus
    # lane-masked (<128-wide) stores make a pallas_call slower than fused XLA.
    if not force_pallas and (M * d_input * d_model < (1 << 21) or d_model < 128):
        out2d = (jnp.dot(x2d, w_t, preferred_element_type=jnp.float32)
                 + b2d).astype(out_dtype)
        return out2d.reshape(*lead_shape, d_model)

    vmem_cap = _vmem_capacity_bytes()           # 64 MiB v7x; 128 MiB v5e/v6e
    vmem_limit = int(vmem_cap * 0.85)           # raise v5e's 16 MiB scoped default
    tile_budget = int(vmem_cap * 0.65)

    flops = 2 * M * d_input * d_model

    # ---- Preferred path: whole weight resident in VMEM, 1-D grid over M. ----
    w_resident = 2 * d_input * d_model * x_bytes        # conservative: 2 buffers
    bias_resident = 2 * d_model * 4
    per_row = 2 * (d_input * x_bytes + d_model * out_bytes)  # dbl-buffered x + out
    tm_max = (tile_budget - w_resident - bias_resident) // per_row

    if tm_max >= min(M, 128):
        if M <= tm_max:
            if M > 256:
                # >= 2 balanced M shards so v7x's two TensorCores both work.
                TM = _round_up(pl.cdiv(M, 2), 16)
            else:
                TM = M                                   # single full block
        else:
            TM = max(16, _round_down(min(tm_max, 4096), 16))
        grid = (pl.cdiv(M, TM),)

        cost = pl.CostEstimate(
            flops=flops,
            transcendentals=0,
            bytes_accessed=(M * d_input * x_bytes          # x: exactly one pass
                            + d_input * d_model * x_bytes  # weight: one read
                            + d_model * 4                  # bias
                            + M * d_model * out_bytes),    # out: one write
        )
        out2d = pl.pallas_call(
            _linear_bias_kernel,
            out_shape=jax.ShapeDtypeStruct((M, d_model), out_dtype),
            grid_spec=pltpu.PrefetchScalarGridSpec(
                num_scalar_prefetch=0,
                grid=grid,
                in_specs=[
                    # Activations: stream (TM, d_input) tiles (partial tail ok).
                    pl.BlockSpec((TM, d_input), lambda i: (i, 0)),
                    # Whole pre-transposed weight, resident (constant index).
                    pl.BlockSpec((d_input, d_model), lambda i: (0, 0)),
                    # Bias, resident.
                    pl.BlockSpec((1, d_model), lambda i: (0, 0)),
                ],
                out_specs=pl.BlockSpec((TM, d_model), lambda i: (i, 0)),
            ),
            compiler_params=pltpu.CompilerParams(
                dimension_semantics=("parallel",),
                vmem_limit_bytes=vmem_limit,
            ),
            cost_estimate=cost,
        )(x2d, w_t, b2d)
        return out2d.reshape(*lead_shape, d_model)

    # ---- Fallback: weight too large for VMEM residency -> K/N-tiled grid. ----
    # TK must DIVIDE d_input: a partial trailing K block would feed unspecified
    # data into the accumulator for valid output rows.
    TK = _pick_divisor_tile(d_input, 512, 128)
    TN = _pick_divisor_tile(d_model, 2048, 128)   # prefer a single N tile
    per_row = 2 * (TK * x_bytes + TN * out_bytes) + TN * 4
    w_tiles = 2 * TK * TN * x_bytes + 2 * TN * 4
    TM = max(16, _round_down(min((tile_budget - w_tiles) // per_row, 1024), 16))
    if M <= TM:
        TM = M

    m_tiles = pl.cdiv(M, TM)
    n_tiles = pl.cdiv(d_model, TN)
    grid = (m_tiles, n_tiles, d_input // TK)

    cost = pl.CostEstimate(
        flops=flops,
        transcendentals=0,
        bytes_accessed=(n_tiles * M * d_input * x_bytes          # x restreamed per N tile
                        + m_tiles * d_input * d_model * x_bytes  # weight per M tile
                        + d_model * 4
                        + M * d_model * out_bytes),
    )
    out2d = pl.pallas_call(
        _linear_bias_kernel_ktiled,
        out_shape=jax.ShapeDtypeStruct((M, d_model), out_dtype),
        grid_spec=pltpu.PrefetchScalarGridSpec(
            num_scalar_prefetch=0,
            grid=grid,
            in_specs=[
                pl.BlockSpec((TM, TK), lambda i, j, k: (i, k)),
                pl.BlockSpec((TK, TN), lambda i, j, k: (k, j)),
                pl.BlockSpec((1, TN), lambda i, j, k: (0, j)),
            ],
            out_specs=pl.BlockSpec((TM, TN), lambda i, j, k: (i, j)),
            scratch_shapes=[pltpu.VMEM((TM, TN), jnp.float32)],
        ),
        compiler_params=pltpu.CompilerParams(
            dimension_semantics=("parallel", "parallel", "arbitrary"),
            vmem_limit_bytes=vmem_limit,
        ),
        cost_estimate=cost,
    )(x2d, w_t, b2d)
    return out2d.reshape(*lead_shape, d_model)


def value_embedding_forward(x, weight, bias, *, d_model, value_linear,
                            value_sqrt, compute_dtype=None, force_pallas=False):
    """x: [batch, seq, d_input]; weight: [d_model, d_input]; bias: [d_model]."""
    if not value_linear:
        # No matmul: pure mem-bound elementwise scale (or identity); a Pallas
        # VMEM round-trip only adds overhead, so leave it to XLA's fused mul.
        return x * math.sqrt(d_model) if value_sqrt else x

    w_t, b2d = prepare_value_embedding_params(
        weight, bias, d_model=d_model, value_sqrt=value_sqrt,
        compute_dtype=compute_dtype)
    return value_embedding_apply(x, w_t, b2d, force_pallas=force_pallas,
                                 out_dtype=x.dtype)


if __name__ == "__main__":
    # Module hyper-params (small, deterministic).
    batch, seq = 2, 8
    d_input, d_model = 32, 64
    value_linear, value_sqrt = True, True

    key = jax.random.PRNGKey(0)
    kx, kw, kb = jax.random.split(key, 3)

    x = jax.random.normal(kx, (batch, seq, d_input), dtype=jnp.float32)
    # Deterministic init mimicking nn.Linear's uniform(-1/sqrt(fan_in), ...).
    bound = 1.0 / math.sqrt(d_input)
    weight = jax.random.uniform(kw, (d_model, d_input), dtype=jnp.float32,
                                minval=-bound, maxval=bound)
    bias = jax.random.uniform(kb, (d_model,), dtype=jnp.float32,
                              minval=-bound, maxval=bound)

    ref = (x @ weight.T + bias) * math.sqrt(d_model)

    # 1) Pallas weight-resident path (forced at this toy size so the kernel runs).
    out = value_embedding_forward(
        x, weight, bias, d_model=d_model, value_linear=value_linear,
        value_sqrt=value_sqrt, force_pallas=True)
    out = jax.block_until_ready(out)
    assert out.shape == (batch, seq, d_model)
    assert jnp.allclose(out, ref, atol=1e-3, rtol=1e-3), (
        float(jnp.max(jnp.abs(out - ref))))

    # 2) Auto path (tiny shape -> XLA fallback guard) gives the same numbers.
    out_auto = value_embedding_forward(
        x, weight, bias, d_model=d_model, value_linear=value_linear,
        value_sqrt=value_sqrt)
    out_auto = jax.block_until_ready(out_auto)
    assert jnp.allclose(out_auto, ref, atol=1e-3, rtol=1e-3)

    # 3) linear-off path (plain fused scale, no kernel).
    out2 = value_embedding_forward(
        x, weight, bias, d_model=d_model, value_linear=False, value_sqrt=True)
    out2 = jax.block_until_ready(out2)
    assert jnp.allclose(out2, x * math.sqrt(d_model), atol=1e-6)

    print("KERNEL_OK")
</pallas_src>

<mosaic_0001>
module attributes {stable_mosaic.version = 11 : i64} {
  func.func @_linear_bias_kernel(%arg0: i32, %arg1: memref<16x32xf32, #tpu.memory_space<vmem>>, %arg2: memref<32x64xf32, #tpu.memory_space<vmem>>, %arg3: memref<1x64xf32, #tpu.memory_space<vmem>>, %arg4: memref<16x64xf32, #tpu.memory_space<vmem>>) attributes {dimension_semantics = [#tpu.dimension_semantics<parallel>], iteration_bounds = array<i64: 1>, scalar_prefetch = 0 : i64, scratch_operands = 0 : i64, tpu.core_type = #tpu.core_type<tc>, window_params = [{transform_indices = @transform_0, window_bounds = array<i64: 16, 32>}, {pipeline_mode = #tpu.pipeline_mode<synchronous>, transform_indices = @transform_1, window_bounds = array<i64: 32, 64>}, {pipeline_mode = #tpu.pipeline_mode<synchronous>, transform_indices = @transform_2, window_bounds = array<i64: 1, 64>}, {transform_indices = @transform_3, window_bounds = array<i64: 16, 64>}]} {
    %c0 = arith.constant 0 : index
    %c0_0 = arith.constant 0 : index
    %0 = vector.load %arg1[%c0, %c0_0] : memref<16x32xf32, #tpu.memory_space<vmem>>, vector<16x32xf32>
    %c0_1 = arith.constant 0 : index
    %c0_2 = arith.constant 0 : index
    %1 = vector.load %arg2[%c0_1, %c0_2] : memref<32x64xf32, #tpu.memory_space<vmem>>, vector<32x64xf32>
    %cst = arith.constant dense<0.000000e+00> : vector<16x64xf32>
    %2 = tpu.matmul %0, %1, %cst {dimension_numbers = #tpu.dot_dimension_numbers<[1], [0], [0], [1], [0, 0, 1, 1], [], []>} : vector<16x32xf32>, vector<32x64xf32>, vector<16x64xf32> -> vector<16x64xf32>
    %c0_3 = arith.constant 0 : index
    %c0_4 = arith.constant 0 : index
    %3 = vector.load %arg3[%c0_3, %c0_4] : memref<1x64xf32, #tpu.memory_space<vmem>>, vector<1x64xf32>
    %4 = vector.broadcast %3 : vector<1x64xf32> to vector<16x64xf32>
    %5 = arith.addf %2, %4 : vector<16x64xf32>
    %c0_5 = arith.constant 0 : index
    %c0_6 = arith.constant 0 : index
    %6 = vector.load %arg4[%c0_5, %c0_6] : memref<16x64xf32, #tpu.memory_space<vmem>>, vector<16x64xf32>
    tpu.vector_store %arg4[%c0_5, %c0_6], %5 {strides = array<i32>} : memref<16x64xf32, #tpu.memory_space<vmem>>, vector<16x64xf32>,
    return
  }
  func.func @transform_0(%arg0: i32) -> (i32, i32) {
    %c0_i32 = arith.constant 0 : i32
    %c0_i32_0 = arith.constant 0 : i32
    return %arg0, %c0_i32 : i32, i32
  }
  func.func @transform_1(%arg0: i32) -> (i32, i32) {
    %c0_i32 = arith.constant 0 : i32
    %c0_i32_0 = arith.constant 0 : i32
    %c0_i32_1 = arith.constant 0 : i32
    return %c0_i32, %c0_i32_0 : i32, i32
  }
  func.func @transform_2(%arg0: i32) -> (i32, i32) {
    %c0_i32 = arith.constant 0 : i32
    %c0_i32_0 = arith.constant 0 : i32
    %c0_i32_1 = arith.constant 0 : i32
    return %c0_i32, %c0_i32_0 : i32, i32
  }
  func.func @transform_3(%arg0: i32) -> (i32, i32) {
    %c0_i32 = arith.constant 0 : i32
    %c0_i32_0 = arith.constant 0 : i32
    return %arg0, %c0_i32 : i32, i32
  }
}

</mosaic_0001>

<bundles_post_ra>
// kernel: tpu_custom_call.1
= control target key start
LH: loop header
LB: loop body
LE: loop exit
PB: predicated region body
PF: predicated region fallthrough
CT: control target
= control target key end

     0   :  { %8 = vsyncpa [#allocation3], 0  ;;  %s298_s0 = inlined_call_operand.hbm [shape: f32[16,32], index: 0, kind: input, shape index: {}]   ;;  %s299_s1 = inlined_call_operand.hbm [shape: f32[32,64], index: 1, kind: input, shape index: {}]   ;;  %s300_s2 = inlined_call_operand.vmem [shape: f32[1,64], index: 2, kind: input, shape index: {}]   ;;  %s301_s3 = inlined_call_operand.hbm [shape: f32[16,64], index: 3, kind: output, shape index: {}]  }
   0x1   :  { %9 = vsyncpa [#allocation6], 0 }
   0x2   :  { %10 = vsyncpa [#allocation4], 0  ;;  %s250_s12 = smov [#allocation2]  }
   0x3   :  { %s16_s13 = sshll.u32 %s250_s12, 4  ;;  %s17_s13 = int_to_ptr.vmem [resolvable:$true] %s16_s13 }
   0x4   :  { %s192_s14 = scalar_lea.vmem %s17_s13, 256  ;;  %p197_p1 = scmp.lt.s32.totalorder %s17_s13, %s17_s13 }
   0x5   :  { %p193_p0 = scmp.ne.s32.totalorder %s17_s13, %s192_s14  ;;  %p198_p2 = scmp.lt.s32.totalorder %s192_s14, %s192_s14 }
   0x7   :  { %p199_p3 = por %p198_p2, %p197_p1 }
   0x9   :  { %p200_p4 = pnand %p199_p3, %p193_p0 }
   0xb   :  { %203 = shalt.err (!%p200_p4)
}
   0xc   :  { %s251_s15 = smov 128   ;;  %s252_s16 = smov 8  }
   0xd   :  { %22 = dma.hbm_to_vmem [thread:$0]  %s298_s0, 256, %s17_s13, [#allocation3], %s251_s15, %s251_s15, %s252_s16  }
   0xe   :  { %s253_s19 = smov [#allocation5]  }
   0xf   :  { %s28_s20 = sshll.u32 %s253_s19, 4  ;;  %s29_s20 = int_to_ptr.vmem [resolvable:$true] %s28_s20 }
  0x10   :  { %s212_s21 = scalar_lea.vmem %s29_s20, 512  ;;  %p217_p6 = scmp.lt.s32.totalorder %s29_s20, %s29_s20 }
  0x11   :  { %p213_p5 = scmp.ne.s32.totalorder %s29_s20, %s212_s21  ;;  %p218_p7 = scmp.lt.s32.totalorder %s212_s21, %s212_s21 }
  0x13   :  { %p219_p8 = por %p218_p7, %p217_p6 }
  0x15   :  { %p220_p9 = pnand %p219_p8, %p213_p5 }
  0x17   :  { %223 = shalt.err (!%p220_p9)
}
  0x18   :  { %34 = dma.hbm_to_vmem [thread:$0]  %s299_s1, 512, %s29_s20, [#allocation6], %s251_s15, %s251_s15, %s252_s16  }
  0x19   :  { %244 = dma.done.wait [#allocation3], 256  }
  0x1a   :  { %245 = vsyncadd [#allocation3], 4294967040 }
  0x1b   :  { %246 = dma.done.wait [#allocation6], 512  }
  0x1c   :  { %247 = vsyncadd [#allocation6], 4294966784  ;;  %vm56_vm0 = vcmask 261120   ;;  %v48_v0 = vld [vmem:[#allocation5 + $0x18] sm:$0xff]  ;;  %v47_v1 = vld [vmem:[#allocation5 + $0x10] sm:$0xff]  ;;  %vm138_vm1 = vcmask 523264  }
  0x1d   :  { %168 = vmatprep.subr.mxu0 %v48_v0  ;;  %v43_v2 = vld [vmem:[#allocation2] sm:$0xff]  ;;  %v46_v3 = vld [vmem:[#allocation5 + $0x8] sm:$0xff]  ;;  %v45_v4 = vld [vmem:[#allocation5] sm:$0xff]  ;;  %s254_s24 = smov [#allocation7]  }
  0x1e   :  { %169 = vmatpush3.msra.mxu0 %v48_v0  ;;  %176 = vmatprep.mubr.msk.f32.mxu0 %vm56_vm0, %v43_v2  ;;  %v44_v5 = vld [vmem:[#allocation2 + $0x8] sm:$0xff]  ;;  %v159_v6 = vld [vmem:[%s300_s2] ss:$0 sm:$0xff]  ;;  %s146_s25 = sshll.u32 %s254_s24, 4  ;;  %s147_s25 = int_to_ptr.vmem [resolvable:$true] %s146_s25 }
  0x1f   :  { %170 = vmatprep.subr.mxu0 %v47_v1  ;;  %s224_s26 = scalar_lea.vmem %s147_s25, 256  ;;  %p229_p11 = scmp.lt.s32.totalorder %s147_s25, %s147_s25 }
  0x20   :  { %171 = vmatpush3.msra.mxu0 %v47_v1  ;;  %p225_p10 = scmp.ne.s32.totalorder %s147_s25, %s224_s26  ;;  %p230_p12 = scmp.lt.s32.totalorder %s224_s26, %s224_s26 }
  0x21   :  { %172 = vmatprep.subr.mxu0 %v46_v3 }
  0x22   :  { %173 = vmatpush3.msra.mxu0 %v46_v3  ;;  %p231_p13 = por %p230_p12, %p229_p11 }
  0x23   :  { %174 = vmatprep.subr.mxu0 %v45_v4 }
  0x24   :  { %175 = vmatpush3.msra.mxu0 %v45_v4  ;;  %p232_p0 = pnand %p231_p13, %p225_p10 }
  0x25   :  { %177 = vmatmul.mubr.msk.f32.vlgmr.msra.gmra.mxu0 %vm56_vm0, %v44_v5 }
  0xe5   :  { %v178_v7 = vpop.f32.mrf.mxu0 }
  0xe6   :  { %v135_v8 = vadd.f32 %v178_v7, %v159_v6 }
  0xe7   :  { %v129_v9 = vpop.f32.mrf.mxu0 }
  0xe8   :  { %v130_v10 = vadd.f32 %v159_v6, %v129_v9  ;;  %140 = vst.msk [vmem:[#allocation7 + $0x8] sm:$0xff] %vm138_vm1, %v135_v8 }
  0xea   :  { %139 = vst.msk [vmem:[#allocation7] sm:$0xff] %vm138_vm1, %v130_v10 }
  0xeb   :  { %235 = shalt.err (!%p232_p0)
}
  0xec   :  { %152 = dma.vmem_to_hbm [thread:$0]  %s147_s25, 256, %s301_s3, [#allocation4], %s251_s15, %s251_s15, %s252_s16  }
  0xed   :  { %248 = dma.done.wait [#allocation4], 256  }
  0xee   :  { %249 = vsyncadd [#allocation4], 4294967040 }
  0xef   :  { %156 = vsyncpa [#allocation3], 1 }
  0xf0   :  { %157 = vsyncpa [#allocation6], 1 }
  0xf1   :  { %158 = vsyncpa [#allocation4], 1 }

</bundles_post_ra>
